<compile_context>
chip_gen: v7x
topology: tpu7x:2x2x1
jax: 0.10.0
libtpu: 0.0.40
codegen_flags: <defaults>
</compile_context>

<pallas_src>
import jax
import jax.numpy as jnp
from jax.experimental import pallas as pl
from jax.experimental.pallas import tpu as pltpu

_MiB = 1024 * 1024


def _residual_conv1x1_kernel(x_ref, w_ref, b_ref, o_ref):
    """One (C, TP) pixel tile:  o = x + (W @ x + b).

    x_ref: (C, TP) VMEM (storage dtype)
    w_ref: (C, C)  VMEM (grid-invariant, single-buffered, already in x.dtype)
    b_ref: (C, 1)  VMEM f32
    o_ref: (C, TP) VMEM (storage dtype)
    """
    x = x_ref[...]
    # Memory-bound op -> MXU has huge slack: for f32 inputs take the multi-pass
    # (HIGHEST precision) f32 matmul for free; bf16 inputs use the native path
    # with f32 accumulation.
    prec = jax.lax.Precision.HIGHEST if x.dtype == jnp.float32 else None
    y = jnp.dot(w_ref[...], x, precision=prec,
                preferred_element_type=jnp.float32)
    o_ref[...] = (y + b_ref[...] + x.astype(jnp.float32)).astype(o_ref.dtype)


def residual_conv1x1(x_nchw, weight, bias):
    """x_nchw: (N, C, H, W); weight: (C_out, C_in) of the 1x1 conv; bias: (C_out,)."""
    N, C, H, W = x_nchw.shape
    assert weight.shape == (C, C) and bias.shape == (C,)
    HW = H * W
    x3 = x_nchw.reshape(N, C, HW)            # metadata-only, no HBM traffic

    elem = x_nchw.dtype.itemsize

    # ---- generation-aware VMEM budget (v5e/v6e: 128 MiB, v7x: 64 MiB) ----
    try:
        vmem_cap = pltpu.get_tpu_info().vmem_capacity_bytes
    except Exception:
        vmem_cap = 64 * _MiB                  # conservative fallback (v7x-sized)
    vmem_limit = min(vmem_cap - 8 * _MiB, int(vmem_cap * 0.80))
    vmem_budget = vmem_limit - 8 * _MiB       # headroom for compiler scratch

    # ---- pixel-tile sizing: grow toward the budget, multiple of 128 lanes ----
    # Per pixel-lane VMEM cost:
    #   2x double-buffered input tile + 2x double-buffered output tile
    #   + in-kernel f32 temporaries (dot result + widened x): 2 * 4 bytes.
    bytes_per_lane = C * (4 * elem + 8)
    fixed = C * C * elem + C * 4              # grid-invariant weight + bias
    tp = max(128, ((vmem_budget - fixed) // bytes_per_lane // 128) * 128)
    tp = min(tp, 1 << 20)                     # sanity cap
    if HW <= tp:
        tp = HW                               # one full-extent pixel block is legal
    # else: tp is a multiple of 128; the partial edge tile is masked by Pallas.

    # ---- keep >= 4 total grid steps so v7x's two TensorCores both get work ----
    if N * pl.cdiv(HW, tp) < 4 and HW > 128:
        want_tiles = pl.cdiv(4, N)
        tp_mc = ((HW // want_tiles) // 128) * 128
        if tp_mc >= 128:
            tp = min(tp, tp_mc)

    grid = (N, pl.cdiv(HW, tp))

    # Hoisted, grid-invariant parameter prep (no per-step casts in the kernel).
    w_arg = weight.astype(x_nchw.dtype)
    b_arg = bias.astype(jnp.float32).reshape(C, 1)

    out3 = pl.pallas_call(
        _residual_conv1x1_kernel,
        out_shape=jax.ShapeDtypeStruct((N, C, HW), x_nchw.dtype),
        grid_spec=pltpu.PrefetchScalarGridSpec(
            num_scalar_prefetch=0,
            grid=grid,
            in_specs=[
                pl.BlockSpec((None, C, tp), lambda n, p: (n, 0, p)),
                pl.BlockSpec((C, C), lambda n, p: (0, 0),
                             pipeline_mode=pl.Buffered(1)),
                pl.BlockSpec((C, 1), lambda n, p: (0, 0),
                             pipeline_mode=pl.Buffered(1)),
            ],
            out_specs=pl.BlockSpec((None, C, tp), lambda n, p: (n, 0, p)),
        ),
        compiler_params=pltpu.CompilerParams(
            dimension_semantics=("parallel", "parallel"),  # v7x: 2 TCs split grid
            vmem_limit_bytes=vmem_limit,
        ),
    )(x3, w_arg, b_arg)

    return out3.reshape(N, C, H, W)           # metadata-only, no HBM traffic


if __name__ == "__main__":
    key = jax.random.PRNGKey(0)
    kx, kw, kb = jax.random.split(key, 3)

    N, C, H, W = 2, 4, 16, 16
    x = jax.random.normal(kx, (N, C, H, W), dtype=jnp.float32)

    # Deterministic parameter init for the inner Conv2d(C, C, 1) module.
    fan_in = C  # 1x1 kernel
    weight = jax.random.normal(kw, (C, C), dtype=jnp.float32) * (1.0 / jnp.sqrt(fan_in))
    bias = jax.random.normal(kb, (C,), dtype=jnp.float32) * 0.1

    out = residual_conv1x1(x, weight, bias)
    out = jax.block_until_ready(out)

    # Pure-JAX reference: x + conv1x1(x)
    ref = x + (jnp.einsum("nchw,oc->nohw", x, weight) + bias.reshape(1, C, 1, 1))
    assert out.shape == (N, C, H, W)
    assert jnp.allclose(out, ref, atol=1e-4, rtol=1e-4)

    print("KERNEL_OK")
</pallas_src>

<mosaic_0001>
module attributes {stable_mosaic.version = 11 : i64} {
  func.func @_residual_conv1x1_kernel(%arg0: i32, %arg1: i32, %arg2: memref<1x4x128xf32, #tpu.memory_space<vmem>>, %arg3: memref<4x4xf32, #tpu.memory_space<vmem>>, %arg4: memref<4x1xf32, #tpu.memory_space<vmem>>, %arg5: memref<1x4x128xf32, #tpu.memory_space<vmem>>) attributes {dimension_semantics = [#tpu.dimension_semantics<parallel>, #tpu.dimension_semantics<parallel>], iteration_bounds = array<i64: 2, 2>, scalar_prefetch = 0 : i64, scratch_operands = 0 : i64, tpu.core_type = #tpu.core_type<tc>, window_params = [{transform_indices = @transform_0, window_bounds = array<i64: 1, 4, 128>}, {pipeline_mode = #tpu.pipeline_mode<synchronous>, transform_indices = @transform_1, window_bounds = array<i64: 4, 4>}, {pipeline_mode = #tpu.pipeline_mode<synchronous>, transform_indices = @transform_2, window_bounds = array<i64: 4, 1>}, {transform_indices = @transform_3, window_bounds = array<i64: 1, 4, 128>}]} {
    %c0 = arith.constant 0 : index
    %c0_0 = arith.constant 0 : index
    %c0_1 = arith.constant 0 : index
    %0 = vector.load %arg2[%c0, %c0_0, %c0_1] : memref<1x4x128xf32, #tpu.memory_space<vmem>>, vector<1x4x128xf32>
    %1 = vector.shape_cast %0 : vector<1x4x128xf32> to vector<4x128xf32>
    %c0_2 = arith.constant 0 : index
    %c0_3 = arith.constant 0 : index
    %2 = vector.load %arg3[%c0_2, %c0_3] : memref<4x4xf32, #tpu.memory_space<vmem>>, vector<4x4xf32>
    %cst = arith.constant dense<0.000000e+00> : vector<4x128xf32>
    %3 = tpu.matmul %2, %1, %cst {dimension_numbers = #tpu.dot_dimension_numbers<[1], [0], [0], [1], [0, 0, 1, 1], [], []>, precision = #tpu.contract_precision<fp32>} : vector<4x4xf32>, vector<4x128xf32>, vector<4x128xf32> -> vector<4x128xf32>
    %c0_4 = arith.constant 0 : index
    %c0_5 = arith.constant 0 : index
    %4 = vector.load %arg4[%c0_4, %c0_5] : memref<4x1xf32, #tpu.memory_space<vmem>>, vector<4x1xf32>
    %5 = vector.broadcast %4 : vector<4x1xf32> to vector<4x128xf32>
    %6 = arith.addf %3, %5 : vector<4x128xf32>
    %7 = arith.addf %6, %1 : vector<4x128xf32>
    %c0_6 = arith.constant 0 : index
    %c0_7 = arith.constant 0 : index
    %c0_8 = arith.constant 0 : index
    %8 = vector.load %arg5[%c0_6, %c0_7, %c0_8] : memref<1x4x128xf32, #tpu.memory_space<vmem>>, vector<1x4x128xf32>
    %9 = vector.shape_cast %8 : vector<1x4x128xf32> to vector<4x128xf32>
    %10 = vector.shape_cast %7 : vector<4x128xf32> to vector<1x4x128xf32>
    tpu.vector_store %arg5[%c0_6, %c0_7, %c0_8], %10 {strides = array<i32>} : memref<1x4x128xf32, #tpu.memory_space<vmem>>, vector<1x4x128xf32>,
    return
  }
  func.func @transform_0(%arg0: i32, %arg1: i32) -> (i32, i32, i32) {
    %c0_i32 = arith.constant 0 : i32
    %c0_i32_0 = arith.constant 0 : i32
    return %arg0, %c0_i32, %arg1 : i32, i32, i32
  }
  func.func @transform_1(%arg0: i32, %arg1: i32) -> (i32, i32) {
    %c0_i32 = arith.constant 0 : i32
    %c0_i32_0 = arith.constant 0 : i32
    %c0_i32_1 = arith.constant 0 : i32
    return %c0_i32, %c0_i32_0 : i32, i32
  }
  func.func @transform_2(%arg0: i32, %arg1: i32) -> (i32, i32) {
    %c0_i32 = arith.constant 0 : i32
    %c0_i32_0 = arith.constant 0 : i32
    %c0_i32_1 = arith.constant 0 : i32
    return %c0_i32, %c0_i32_0 : i32, i32
  }
  func.func @transform_3(%arg0: i32, %arg1: i32) -> (i32, i32, i32) {
    %c0_i32 = arith.constant 0 : i32
    %c0_i32_0 = arith.constant 0 : i32
    return %arg0, %c0_i32, %arg1 : i32, i32, i32
  }
}

</mosaic_0001>

<bundles_post_ra>
// kernel: tpu_custom_call.1
= control target key start
LH: loop header
LB: loop body
LE: loop exit
PB: predicated region body
PF: predicated region fallthrough
CT: control target
= control target key end

     0   :  { %8 = vsyncpa [#allocation3], 0  ;;  %s1273_s0 = inlined_call_operand.hbm [shape: f32[2,4,256], index: 0, kind: input, shape index: {}]   ;;  %s1274_s1 = inlined_call_operand.vmem [shape: f32[4,4], index: 1, kind: input, shape index: {}]   ;;  %s1275_s2 = inlined_call_operand.vmem [shape: f32[4,1], index: 2, kind: input, shape index: {}]   ;;  %s1276_s3 = inlined_call_operand.hbm [shape: f32[2,4,256], index: 3, kind: output, shape index: {}]  }
   0x1   :  { %10 = vsyncpa [#allocation3 + $0x1], 0 }
   0x2   :  { %11 = vsyncpa [#allocation4], 0 }
   0x3   :  { %13 = vsyncpa [#allocation4 + $0x1], 0  ;;  %s1063_s12 = smov 0   ;;  %s1065_s13 = smov 0  }
   0x4   :  { %s1067_s14 = smov 0   ;;  %s1069_s15 = smov 0  }
   0x5   :  { %s1071_s16 = smov 0   ;;  %s1073_s17 = smov 0  }
   0x6   :  { %s1075_s18 = smov 0   ;;  %s1077_s19 = smov 0  }
   0x7 LB: > { %s769_s20 = sadd.s32 4294967295, %s1036_s19   ;;  %s770_s21 = sadd.s32 4294967294, %s1036_s19   ;;  %s1036_s19 = sphi %s1077_s19, %s19_s19   ;;  %s1032_s18 = sphi %s1075_s18, %s1293_s18   ;;  %s1028_s17 = sphi %s1073_s17, %s1292_s17   ;;  %s1024_s16 = sphi %s1071_s16, %s1291_s16   ;;  %s1020_s15 = sphi %s1069_s15, %s1290_s15   ;;  %s1016_s14 = sphi %s1067_s14, %s1289_s14   ;;  %s1012_s13 = sphi %s1065_s13, %s1288_s13   ;;  %s1008_s12 = sphi %s1063_s12, %s1287_s12  }
   0x8   : > { %s28_s22 = sadd.s32 1, %s1028_s17  ;;  %s31_s23 = sadd.s32 1, %s1032_s18 }
   0x9   : > { %p29_p0 = scmp.ge.s32.totalorder %s28_s22, 2  ;;  %s40_s24 = sadd.s32 1, %s1016_s14 }
   0xa   : > { %p47_p1 = scmp.ne.s32.totalorder %s1016_s14, %s1012_s13  ;;  %p48_p2 = scmp.eq.s32.totalorder %s1036_s19, 0 }
   0xb   : > { %s1295_s22 = smov (%p29_p0, %s28_s22), 0  ;;  %s1297_s23 = smov (!%p29_p0, %s31_s23), %s1032_s18 }
   0xc   : > { %s36_s25 = ssub.s32 %s1028_s17, %s1295_s22  ;;  %p1116_p3 = por %p48_p2, %p47_p1 }
   0xd   : > { %p33_p4 = scmp.ge.s32.totalorder %s1297_s23, 2  ;;  %p53_p5 = scmp.ne.s32.totalorder %s1012_s13, %s1008_s12 }
   0xe   : > { %p54_p6 = scmp.eq.s32.totalorder %s769_s20, 0  ;;  %p121_p7 = scmp.eq.s32.totalorder %s769_s20, 3 }
   0xf   : > { %s1299_s23 = smov (%p33_p4, %s1297_s23), 0  ;;  %p127_p10 = scmp.eq.s32.totalorder %s770_s21, 3 }
  0x10   : > { %p1124_p8 = por %p54_p6, %p53_p5  ;;  %p1128_p9 = por %p121_p7, %p47_p1 }
  0x11   : > { %s35_s29 = ssub.s32 %s1032_s18, %s1299_s23  ;;  %p1134_p12 = por %p127_p10, %p53_p5 }
  0x12   : > { %s1280_s28 = scalar_select %p1128_p9, 1, 0 }
  0x13   : > { %s37_s30 = sor.u32 %s36_s25, %s35_s29  ;;  %p838_p13 = scmp.lt.s32.totalorder %s1036_s19, 4 }
  0x14   : > { %p38_p11 = scmp.eq.s32.totalorder %s37_s30, 0  ;;  %s153_s5 = sand.u32 1, %s1016_s14  }
  0x15   : > { %s1281_s4 = scalar_select %p1134_p12, 1, 0 }
  0x16   : > { %s1141_s6 = scalar_select %p38_p11, %s1016_s14, %s40_s24  }
  0x17   : > { %s773_s7 = sshll.u32 %s153_s5, 2  ;;  %s774_s8 = sshll.u32 %s1032_s18, 1 }
  0x18   : > { %s162_s9 = sadd.s32 %s1028_s17, %s774_s8  ;;  %s157_s10 = scalar_lea.vmem [#allocation2], %s773_s7 }
  0x19   : > { %s166_s11 = sshll.u32 %s157_s10, 4  ;;  %s775_s20 = sshll.u32 %s162_s9, 6  ;;  %s1145_s11 = int_to_ptr.vmem [resolvable:$true] %s166_s11 }
  0x1a   : > { %s1150_s29 = scalar_lea.hbm %s1273_s0, %s775_s20  ;;  %p1154_p0 = pnand %p838_p13, %p1116_p3 }
  0x1b   : > { %s154_s30 = scalar_lea.sflag [#allocation3], %s153_s5  ;;  %s908_s7 = scalar_lea.hbm %s1150_s29, 64 }
  0x1c   : > { %p909_p4 = scmp.ne.s32.totalorder %s1150_s29, %s908_s7  ;;  %p910_p5 = pneg %p1154_p0 }
  0x1d   : > { %s913_s9 = scalar_lea.hbm %s1273_s0, 256  ;;  %p914_p3 = scmp.lt.u32.totalorder %s1150_s29, %s1273_s0 }
  0x1e   : > { %p911_p6 = pnand %p910_p5, %p909_p4  ;;  %p915_p10 = scmp.lt.u32.totalorder %s913_s9, %s908_s7 }
  0x1f   : > { %p917_p13 = scmp.lt.u32.totalorder %s908_s7, %s1150_s29 }
  0x20   : > { %p912_p7 = pneg %p911_p6  ;;  %p916_p11 = por %p915_p10, %p914_p3 }
  0x22   : > { %p918_p1 = por %p917_p13, %p916_p11 }
  0x24   : > { %p919_p2 = pnand %p918_p1, %p912_p7 }
  0x26   : > { %922 = shalt.err (!%p919_p2)
}
  0x27   : > { %s923_s5 = scalar_lea.vmem %s1145_s11, 64  ;;  %s1038_s21 = smov [#allocation2]  }
  0x28   : > { %p924_p4 = scmp.ne.s32.totalorder %s1145_s11, %s923_s5  ;;  %s928_s25 = sshll.u32 %s1038_s21, 4  ;;  %s929_s25 = int_to_ptr.vmem [resolvable:$false] %s928_s25 }
  0x29   : > { %s930_s26 = scalar_lea.vmem %s929_s25, 128  ;;  %p931_p9 = scmp.lt.s32.totalorder %s1145_s11, %s929_s25 }
  0x2a   : > { %p926_p6 = pnand %p924_p4, %p910_p5  ;;  %p932_p3 = scmp.lt.s32.totalorder %s930_s26, %s923_s5 }
  0x2c   : > { %p927_p12 = pneg %p926_p6  ;;  %p933_p10 = por %p932_p3, %p931_p9 }
  0x2e   : > { %p934_p11 = pnand %p933_p10, %p927_p12 }
  0x30   : > { %937 = shalt.err (!%p934_p11)
}
  0x31   : > { %833 = dma.hbm_to_vmem [thread:$0]  (!%p1154_p0), %s1150_s29, 64, %s1145_s11, %s154_s30  }
  0x32   : > { %p1283_p1 = scmp.lt.s32.totalorder %s1036_s19, 5  ;;  %p1284_p2 = scmp.ge.s32.totalorder %s1036_s19, 1 }
  0x34   : > { %p172_p5 = pnand %p1284_p2, %p1283_p1 }
  0x35   : > { %s1190_s7 = sand.u32 (!%p172_p5), 1, %s1012_s13  }
  0x36   : > { %175 = sbr.rel (%p172_p5) target bundleno = 316 (0x13c), region = 32  ;;  %s777_s8 = sshll.u32 (!%p172_p5), %s1190_s7, 2 }
  0x37   : > { %s178_s9 = scalar_lea.sflag (!%p172_p5), [#allocation3], %s1190_s7  ;;  %s181_s24 = scalar_lea.vmem (!%p172_p5), [#allocation2], %s777_s8 }
  0x3d   : > { %999 = dma.done.wait (%p1124_p8), %s178_s9, 64  }
  0x3e   : > { %1001 = vsyncadd (%p1124_p8), %s178_s9, 4294967232  ;;  %v1039_v0 = vmov 0.0   ;;  %vm1040_vm0 = vmmov 0   ;;  %v1041_v1 = vmov 0   ;;  %vm216_vm1 = vcmask 1043456   ;;  %s780_s10 = sshll.u32 %s1024_s16, 1 }
  0x3f   : > { %796 = vmatprep.subr.mxu0 %v1039_v0  ;;  %798 = vmatprep.mubr.msk.f32.mxu0 %vm1040_vm0, %v1039_v0  ;;  %vm212_vm2 = vcmask 31744   ;;  %v204_v2 = vld [vmem:[%s181_s24] sm:$0xf]  ;;  %s680_s20 = sadd.s32 %s1020_s15, %s780_s10  ;;  %s203_s21 = scalar_lea.vmem [#allocation5], %s777_s8 }
  0x40   : > { %801 = vmatprep.subr.mxu1 %v1039_v0  ;;  %803 = vmatprep.mubr.msk.f32.mxu1 %vm1040_vm0, %v1039_v0  ;;  %v205_v3 = vld [vmem:[%s1274_s1] sm:$0xf]  ;;  %v218_v5 = vsel %vm216_vm1, %v204_v2, 0  ;;  %s781_s5 = sshll.u32 %s680_s20, 6  ;;  %s684_s25 = sshll.u32 %s203_s21, 4  ;;  %s1221_s25 = int_to_ptr.vmem [resolvable:$true] %s684_s25 }
  0x41   : > { %907 = vset.pattern.permute.xlu0 %v1041_v1  ;;  %v206_v4 = vld [vmem:[%s1275_s2] sm:$0xf]  ;;  %v214_v6 = vsel %vm212_vm2, %v205_v3, 0  ;;  %v221_v7 = vand.u32 4294901760, %v218_v5  ;;  %s1219_s9 = scalar_lea.hbm %s1276_s3, %s781_s5  ;;  %s669_s15 = scalar_lea.sflag [#allocation4], %s1190_s7 }
  0x42   : > { %209 = vperm.xlu0 %907, %v206_v4   ;;  %v286_v8 = vand.u32 4294901760, %v214_v6  ;;  %s938_s24 = scalar_lea.vmem %s1221_s25, 64  ;;  %p1285_p9 = scmp.ne.s32.totalorder %s1280_s28, 0 }
  0x43   : > { %797 = vmatpush3.msra.mxu0 %v221_v7  ;;  %v298_v10 = vsub.f32 %v218_v5, %v221_v7  ;;  %p939_p8 = scmp.ne.s32.totalorder %s1221_s25, %s938_s24  ;;  %s1042_s8 = smov [#allocation5]  }
  0x44   : > { %v287_v9 = vsub.f32 %v214_v6, %v286_v8  ;;  %806 = vmatprep.subr.mxu0 %v1039_v0  ;;  %s942_s11 = sshll.u32 %s1042_s8, 4  ;;  %s943_s11 = int_to_ptr.vmem [resolvable:$false] %s942_s11 }
  0x45   : > { %v299_v12 = vand.u32 4294901760, %v298_v10  ;;  %p940_p12 = pnand %p939_p8, %p1285_p9  ;;  %s944_s29 = scalar_lea.vmem %s943_s11, 128 }
  0x46   : > { %v288_v11 = vand.u32 4294901760, %v287_v9  ;;  %p945_p7 = scmp.lt.s32.totalorder %s1221_s25, %s943_s11  ;;  %p946_p13 = scmp.lt.s32.totalorder %s944_s29, %s938_s24 }
  0x47   : > { %v300_v14 = vsub.f32 %v298_v10, %v299_v12  ;;  %p941_p0 = pneg %p940_p12 }
  0x48   : > { %v289_v13 = vsub.f32 %v287_v9, %v288_v11  ;;  %p947_p4 = por %p946_p13, %p945_p7 }
  0x49   : > { %v301_v16 = vand.u32 4294901760, %v300_v14 }
  0x4a   : > { %v290_v15 = vand.u32 4294901760, %v289_v13  ;;  %p948_p6 = pnand %p947_p4, %p941_p0 }
  0x4b   : > { %802 = vmatpush3.msra.mxu1 %v301_v16 }
  0x4c   : > { %799 = vmatmul.mubr.f32.vlgmr.msra.gmra.mrb[0].mxu0 %v290_v15  ;;  %804 = vmatmul.mubr.f32.vlgmr.msra.gmra.mrb[0].mxu1 %v286_v8 }
  0x4d   : > { %807 = vmatpush3.msra.mxu0 %v298_v10  ;;  %811 = vmatprep.subr.mxu1 %v1039_v0 }
  0x4e   : > { %808 = vmatprep.mubr.msk.f32.mxu0 %vm1040_vm0, %v1039_v0  ;;  %812 = vmatpush3.msra.mxu1 %v221_v7 }
  0x4f   : > { %816 = vmatprep.subr.mxu0 %v1039_v0  ;;  %813 = vmatprep.mubr.msk.f32.mxu1 %vm1040_vm0, %v1039_v0 }
  0x50   : > { %809 = vmatmul.mubr.f32.vlgmr.msra.gmra.mrb[2].mxu0 %v287_v9  ;;  %814 = vmatmul.mubr.f32.vlgmr.msra.gmra.mrb[2].mxu1 %v288_v11 }
  0x51   : > { %817 = vmatpush3.msra.mxu0 %v299_v12  ;;  %821 = vmatprep.subr.mxu1 %v1039_v0 }
  0x52   : > { %818 = vmatprep.mubr.msk.f32.mxu0 %vm1040_vm0, %v1039_v0  ;;  %822 = vmatpush3.msra.mxu1 %v221_v7 }
  0x53   : > { %823 = vmatprep.mubr.msk.f32.mxu1 %vm1040_vm0, %v1039_v0 }
  0x54   : > { %819 = vmatmul.mubr.f32.vlgmr.msra.gmra.mrb[4].mxu0 %v286_v8  ;;  %824 = vmatmul.mubr.f32.vlgmr.msra.gmra.mrb[4].mxu1 %v286_v8 }
  0xc1   : > { %v210_v17 = vpop.permute.xlu0 %209 }
 0x11f   : > { %v292_v18 = vpop.f32.mrb[0].mxu0  ;;  %v368_v21 = vpop.f32.mrb[0].mxu1 }
 0x120   : > { %v293_v19 = vadd.f32 %v292_v18, %v210_v17  ;;  %v800_v20 = vpop.f32.mrb[1].mxu0  ;;  %v805_v22 = vpop.f32.mrb[1].mxu1 }
 0x122   : > { %v369_v23 = vadd.f32 %v368_v21, %v293_v19 }
 0x123   : > { %v442_v24 = vpop.f32.mrb[2].mxu0  ;;  %v516_v27 = vpop.f32.mrb[2].mxu1 }
 0x124   : > { %v443_v25 = vadd.f32 %v442_v24, %v369_v23  ;;  %v810_v26 = vpop.f32.mrb[3].mxu0  ;;  %v815_v28 = vpop.f32.mrb[3].mxu1 }
 0x126   : > { %v517_v29 = vadd.f32 %v516_v27, %v443_v25 }
 0x127   : > { %v590_v30 = vpop.f32.mrb[4].mxu0  ;;  %v662_v33 = vpop.f32.mrb[4].mxu1 }
 0x128   : > { %v591_v31 = vadd.f32 %v590_v30, %v517_v29  ;;  %v820_v32 = vpop.f32.mrb[5].mxu0  ;;  %v825_v34 = vpop.f32.mrb[5].mxu1 }
 0x12a   : > { %v663_v35 = vadd.f32 %v662_v33, %v591_v31 }
 0x12c   : > { %v666_v36 = vadd.f32 %v663_v35, %v204_v2 }
 0x12e   : > { %667 = vst [vmem:[%s203_s21] sm:$0xf] %v666_v36 }
 0x12f   : > { %951 = shalt.err (!%p948_p6)
}
 0x130   : > { %s952_s7 = scalar_lea.hbm %s1219_s9, 64  ;;  %s956_s10 = scalar_lea.hbm %s1276_s3, 256 }
 0x131   : > { %p953_p3 = scmp.ne.s32.totalorder %s1219_s9, %s952_s7  ;;  %p957_p1 = scmp.lt.u32.totalorder %s1219_s9, %s1276_s3 }
 0x132   : > { %p958_p2 = scmp.lt.u32.totalorder %s956_s10, %s952_s7  ;;  %p960_p8 = scmp.lt.u32.totalorder %s952_s7, %s1219_s9 }
 0x133   : > { %p954_p10 = pnand %p953_p3, %p1285_p9 }
 0x134   : > { %p959_p5 = por %p958_p2, %p957_p1 }
 0x135   : > { %p955_p11 = pneg %p954_p10 }
 0x136   : > { %p961_p12 = por %p960_p8, %p959_p5 }
 0x138   : > { %p962_p0 = pnand %p961_p12, %p955_p11 }
 0x13a   : > { %965 = shalt.err (!%p962_p0)
}
 0x13b   : > { %828 = dma.vmem_to_hbm [thread:$0]  (%p1285_p9), %s1221_s25, 64, %s1219_s9, %s669_s15  }
 0x13c PF: > { %p839_p7 = scmp.ge.s32.totalorder %s1036_s19, 2  ;;  %s696_s21 = sand.u32 1, %s1008_s12  }
 0x13d   : > { %p1286_p13 = scmp.ne.s32.totalorder %s1281_s4, 0  ;;  %s697_s16 = scalar_lea.sflag [#allocation4], %s696_s21 }
 0x13f   : > { %p835_p4 = pnand %p839_p7, %p1286_p13 }
 0x141   : > { %1003 = dma.done.wait (!%p835_p4), %s697_s16, 64  }
 0x142   : > { %1005 = vsyncadd (!%p835_p4), %s697_s16, 4294967232  ;;  %s19_s19 = sadd.s32 1, %s1036_s19   ;;  %s1287_s12 = smov %s1012_s13 }
 0x143   : > { %p16_p6 = scmp.ge.s32.totalorder %s19_s19, 6   ;;  %s1288_s13 = smov %s1016_s14 }
 0x144   : > { %s1289_s14 = smov %s1141_s6  ;;  %s1290_s15 = smov %s1028_s17 }
 0x145   : > { %s1291_s16 = smov %s1032_s18  ;;  %s1292_s17 = smov %s1295_s22 }
 0x146   : > { %s1293_s18 = smov %s1299_s23  ;;  %18 = sbr.rel (!%p16_p6) target bundleno = 7 (0x7), region = 77 }
 0x14d   :  { %702 = vsyncpa [#allocation3], 1 }
 0x14e   :  { %704 = vsyncpa [#allocation3 + $0x1], 1 }
 0x14f   :  { %705 = vsyncpa [#allocation4], 1 }
 0x150   :  { %707 = vsyncpa [#allocation4 + $0x1], 1 }

</bundles_post_ra>
